<compile_context>
chip_gen: v7x
topology: tpu7x:2x2x1
jax: 0.10.0
libtpu: 0.0.40
codegen_flags: <defaults>
</compile_context>

<pallas_src>
import jax
import jax.numpy as jnp
from jax.experimental import pallas as pl
from jax.experimental.pallas import tpu as pltpu


def _linear_kernel(x_ref, w_ref, b_ref, o_ref):
    # x_ref: (TB, F)    f32 VMEM tile of the flattened input (streamed)
    # w_ref: (1, F)     f32 VMEM weight row, resident across all grid steps
    # b_ref: (1, 1)     f32 SMEM scalar bias
    # o_ref: (1, 1, TB) f32 VMEM lane-dense output row for this batch tile
    # Single expression so Mosaic fuses the VPU multiply into the lane reduce
    # (no materialized (TB, F) product).
    row_sums = jnp.sum(x_ref[...] * w_ref[...], axis=-1)          # (TB,) f32
    o_ref[...] = (row_sums + b_ref[0, 0]).reshape(o_ref.shape).astype(o_ref.dtype)


def _round_up(n, m):
    return ((n + m - 1) // m) * m


def subnetwork_forward(x, w, b, *, tile_b=4096):
    """Forward of Subnetwork: flatten input and apply Linear(784, 1).

    x: (B, C, H, W) float32 with C*H*W == 784
    w: (784, 1) float32  (transposed PyTorch weight, i.e. W^T)
    b: (1,) float32
    returns: (B, 1) float32
    """
    B = x.shape[0]
    x_flat = x.reshape(B, -1)                 # glue reshape in plain JAX
    in_features = x_flat.shape[1]
    assert w.shape == (in_features, 1)

    w_row = w.reshape(1, in_features)         # (1, F): VPU row-broadcast weight
    b_2d = b.reshape(1, 1)                    # scalar bias for SMEM

    # Pad only up to a multiple of 8 rows (<= 7 junk rows, ~22 KB); the ragged
    # last grid block (B not a multiple of TB) is handled by Pallas directly.
    b8 = _round_up(B, 8)
    if b8 != B:
        x_flat = jnp.pad(x_flat, ((0, b8 - B), (0, 0)))
    tb = min(tile_b, b8)                      # multiple of 8 by construction
    num_tiles = pl.cdiv(b8, tb)

    out = pl.pallas_call(
        _linear_kernel,
        out_shape=jax.ShapeDtypeStruct((num_tiles, 1, tb), jnp.float32),
        grid_spec=pl.GridSpec(
            grid=(num_tiles,),
            in_specs=[
                # x: one (TB, 784) tile per grid step -> double-buffered DMAs
                pl.BlockSpec((tb, in_features), lambda i: (i, 0)),
                # weight row: same block every step (stays resident in VMEM)
                pl.BlockSpec((1, in_features), lambda i: (0, 0)),
                # bias: scalar in SMEM
                pl.BlockSpec((1, 1), lambda i: (0, 0),
                             memory_space=pltpu.MemorySpace.SMEM),
            ],
            # Lane-dense (1, 1, TB) output row per tile (contiguous stores).
            out_specs=pl.BlockSpec((1, 1, tb), lambda i: (i, 0, 0)),
        ),
        compiler_params=pltpu.CompilerParams(
            dimension_semantics=("parallel",),
            vmem_limit_bytes=48 * 1024 * 1024,
        ),
    )(x_flat, w_row, b_2d)

    # Un-tile: (num_tiles, 1, TB) -> flat rows -> drop padding -> (B, 1)
    return out.reshape(-1)[:B].reshape(B, 1)


if __name__ == "__main__":
    key = jax.random.PRNGKey(0)
    k_x, k_w, k_b = jax.random.split(key, 3)

    # Small input consistent with 784 = 1*28*28 flattened features.
    B = 2
    x = jax.random.normal(k_x, (B, 1, 28, 28), dtype=jnp.float32)

    # Deterministic PyTorch-style init: U(-1/sqrt(fan_in), 1/sqrt(fan_in))
    fan_in = 784
    bound = 1.0 / (fan_in ** 0.5)
    w = jax.random.uniform(k_w, (fan_in, 1), minval=-bound, maxval=bound,
                           dtype=jnp.float32)   # stored as (in, out) = W^T
    b = jax.random.uniform(k_b, (1,), minval=-bound, maxval=bound,
                           dtype=jnp.float32)

    y = subnetwork_forward(x, w, b)
    jax.block_until_ready(y)

    # Sanity check against plain JAX reference.
    ref = x.reshape(B, -1) @ w + b.reshape(1, 1)
    assert y.shape == (B, 1)
    assert jnp.allclose(y, ref, atol=1e-5, rtol=1e-5)

    print("KERNEL_OK")
</pallas_src>

<mosaic_0001>
module attributes {stable_mosaic.version = 11 : i64} {
  func.func @_linear_kernel(%arg0: i32, %arg1: memref<8x784xf32, #tpu.memory_space<vmem>>, %arg2: memref<1x784xf32, #tpu.memory_space<vmem>>, %arg3: memref<1x1xf32, #tpu.memory_space<smem>>, %arg4: memref<1x1x8xf32, #tpu.memory_space<vmem>>) attributes {dimension_semantics = [#tpu.dimension_semantics<parallel>], iteration_bounds = array<i64: 1>, scalar_prefetch = 0 : i64, scratch_operands = 0 : i64, tpu.core_type = #tpu.core_type<tc>, window_params = [{transform_indices = @transform_0, window_bounds = array<i64: 8, 784>}, {pipeline_mode = #tpu.pipeline_mode<synchronous>, transform_indices = @transform_1, window_bounds = array<i64: 1, 784>}, {transform_indices = @transform_2, window_bounds = array<i64: 1, 1>}, {transform_indices = @transform_3, window_bounds = array<i64: 1, 1, 8>}]} {
    %c0 = arith.constant 0 : index
    %c0_0 = arith.constant 0 : index
    %0 = vector.load %arg1[%c0, %c0_0] : memref<8x784xf32, #tpu.memory_space<vmem>>, vector<8x784xf32>
    %c0_1 = arith.constant 0 : index
    %c0_2 = arith.constant 0 : index
    %1 = vector.load %arg2[%c0_1, %c0_2] : memref<1x784xf32, #tpu.memory_space<vmem>>, vector<1x784xf32>
    %2 = vector.broadcast %1 : vector<1x784xf32> to vector<8x784xf32>
    %3 = arith.mulf %0, %2 : vector<8x784xf32>
    %cst = arith.constant dense<0.000000e+00> : vector<8xf32>
    %4 = vector.multi_reduction <add>, %3, %cst [1] : vector<8x784xf32> to vector<8xf32>
    %c0_3 = arith.constant 0 : index
    %c0_4 = arith.constant 0 : index
    %5 = memref.load %arg3[%c0_3, %c0_4] : memref<1x1xf32, #tpu.memory_space<smem>>
    %6 = vector.broadcast %5 : f32 to vector<8xf32>
    %7 = arith.addf %4, %6 : vector<8xf32>
    %8 = vector.shape_cast %7 : vector<8xf32> to vector<1x1x8xf32>
    %c0_5 = arith.constant 0 : index
    %c0_6 = arith.constant 0 : index
    %c0_7 = arith.constant 0 : index
    %9 = vector.load %arg4[%c0_5, %c0_6, %c0_7] : memref<1x1x8xf32, #tpu.memory_space<vmem>>, vector<1x1x8xf32>
    tpu.vector_store %arg4[%c0_5, %c0_6, %c0_7], %8 {strides = array<i32>} : memref<1x1x8xf32, #tpu.memory_space<vmem>>, vector<1x1x8xf32>,
    return
  }
  func.func @transform_0(%arg0: i32) -> (i32, i32) {
    %c0_i32 = arith.constant 0 : i32
    %c0_i32_0 = arith.constant 0 : i32
    return %arg0, %c0_i32 : i32, i32
  }
  func.func @transform_1(%arg0: i32) -> (i32, i32) {
    %c0_i32 = arith.constant 0 : i32
    %c0_i32_0 = arith.constant 0 : i32
    %c0_i32_1 = arith.constant 0 : i32
    return %c0_i32, %c0_i32_0 : i32, i32
  }
  func.func @transform_2(%arg0: i32) -> (i32, i32) {
    %c0_i32 = arith.constant 0 : i32
    %c0_i32_0 = arith.constant 0 : i32
    %c0_i32_1 = arith.constant 0 : i32
    return %c0_i32, %c0_i32_0 : i32, i32
  }
  func.func @transform_3(%arg0: i32) -> (i32, i32, i32) {
    %c0_i32 = arith.constant 0 : i32
    %c0_i32_0 = arith.constant 0 : i32
    %c0_i32_1 = arith.constant 0 : i32
    return %arg0, %c0_i32, %c0_i32_0 : i32, i32, i32
  }
}

</mosaic_0001>

<bundles_post_ra>
// kernel: tpu_custom_call.1
= control target key start
LH: loop header
LB: loop body
LE: loop exit
PB: predicated region body
PF: predicated region fallthrough
CT: control target
= control target key end

     0   :  { %9 = vsyncpa [#allocation4], 0  ;;  %s219_s0 = inlined_call_operand.hbm [shape: f32[8,784], index: 0, kind: input, shape index: {}]   ;;  %s220_s1 = inlined_call_operand.vmem [shape: f32[1,784], index: 1, kind: input, shape index: {}]   ;;  %s221_s2 = inlined_call_operand.<no memory space> [shape: f32[1,1], index: 2, kind: input, shape index: {}]   ;;  %s222_s3 = inlined_call_operand.hbm [shape: f32[1,1,8], index: 3, kind: output, shape index: {}]  }
   0x1   :  { %10 = vsyncpa [#allocation5], 0  ;;  %s167_s12 = smov [#allocation3]   ;;  %s119_s16 = scalar_lea.hbm %s219_s0, 896 }
   0x2   :  { %s17_s13 = sshll.u32 %s167_s12, 4  ;;  %p120_p0 = scmp.ne.s32.totalorder %s219_s0, %s119_s16  ;;  %s18_s13 = int_to_ptr.vmem [resolvable:$true] %s17_s13 }
   0x3   :  { %p123_p1 = scmp.lt.u32.totalorder %s119_s16, %s219_s0 }
   0x5   :  { %p125_p2 = pnand %p123_p1, %p120_p0 }
   0x7   :  { %128 = shalt.err (!%p125_p2)
}
   0x8   :  { %s129_s21 = scalar_lea.vmem %s18_s13, 896  ;;  %p134_p4 = scmp.lt.s32.totalorder %s18_s13, %s18_s13 }
   0x9   :  { %p130_p3 = scmp.ne.s32.totalorder %s18_s13, %s129_s21  ;;  %p135_p5 = scmp.lt.s32.totalorder %s129_s21, %s129_s21 }
   0xb   :  { %p136_p6 = por %p135_p5, %p134_p4 }
   0xd   :  { %p137_p7 = pnand %p136_p6, %p130_p3 }
   0xf   :  { %140 = shalt.err (!%p137_p7)
}
  0x10   :  { %20 = dma.hbm_to_vmem [thread:$0]  %s219_s0, 896, %s18_s13, [#allocation4]  }
  0x11   :  { %163 = dma.done.wait [#allocation4], 896  }
  0x12   :  { %164 = vsyncadd [#allocation4], 4294966400  ;;  %v37_v0 = vlaneseq  ;;  %v28_v6 = vld [vmem:[#allocation3] sm:$0xff]  ;;  %v29_v8 = vld [vmem:[#allocation3 + $0x8] sm:$0xff]  ;;  %vm84_vm0 = vcmask 130048   ;;  %v90_v40 = vstv %s221_s2  ;;  %s168_s26 = smov [#allocation6]  }
  0x13   :  { %v30_v9 = vld [vmem:[#allocation3 + $0x10] sm:$0xff]  ;;  %v35_v10 = vld [vmem:[%s220_s1] sm:$0x7f]  ;;  %v31_v17 = vld [vmem:[#allocation3 + $0x18] sm:$0xff]  ;;  %s108_s27 = sshll.u32 %s168_s26, 4  ;;  %vm100_vm1 = vcmask 57344   ;;  %s109_s27 = int_to_ptr.vmem [resolvable:$true] %s108_s27 }
  0x14   :  { %v38_v1 = vshrl.u32 %v37_v0, 7  ;;  %v32_v22 = vld [vmem:[#allocation3 + $0x20] sm:$0xff]  ;;  %v34_v24 = vld [vmem:[#allocation3 + $0x30] sm:$0xff]  ;;  %v33_v28 = vld [vmem:[#allocation3 + $0x28] sm:$0xff]  ;;  %v94_v38 = vand.u32 127, %v37_v0  ;;  %s141_s28 = scalar_lea.vmem %s109_s27, 16  ;;  %p146_p9 = scmp.lt.s32.totalorder %s109_s27, %s109_s27 }
  0x15   :  { %p142_p8 = scmp.ne.s32.totalorder %s109_s27, %s141_s28  ;;  %s145_s29 = scalar_lea.vmem %s109_s27, 32 }
  0x16   :  { %v39_v2 = vsub.s32 0, %v38_v1  ;;  %v43_v3 = vsub.s32 1, %v38_v1  ;;  %v47_v4 = vsub.s32 2, %v38_v1  ;;  %v51_v5 = vsub.s32 3, %v38_v1  ;;  %p147_p10 = scmp.lt.s32.totalorder %s145_s29, %s141_s28 }
  0x17   :  { %v55_v7 = vsub.s32 4, %v38_v1  ;;  %v59_v11 = vsub.s32 5, %v38_v1  ;;  %v63_v12 = vsub.s32 6, %v38_v1  ;;  %v97_v39 = vsub.s32 %v94_v38, %v38_v1 }
  0x18   :  { %v40_v13 = vrot.slane %v35_v10, %v39_v2  ;;  %v44_v14 = vrot.slane %v35_v10, %v43_v3  ;;  %v48_v15 = vrot.slane %v35_v10, %v47_v4  ;;  %v52_v16 = vrot.slane %v35_v10, %v51_v5  ;;  %p148_p11 = por %p147_p10, %p146_p9 }
  0x19   :  { %v56_v18 = vrot.slane %v35_v10, %v55_v7  ;;  %v64_v23 = vrot.slane %v35_v10, %v63_v12  ;;  %v60_v25 = vrot.slane %v35_v10, %v59_v11 }
  0x1a   :  { %v72_v19 = vmul.f32 %v40_v13, %v28_v6  ;;  %v73_v20 = vmul.f32 %v44_v14, %v29_v8  ;;  %v74_v21 = vmul.f32 %v48_v15, %v30_v9  ;;  %v75_v26 = vmul.f32 %v52_v16, %v31_v17  ;;  %p149_p12 = pnand %p148_p11, %p142_p8 }
  0x1b   :  { %v76_v29 = vmul.f32 %v56_v18, %v32_v22  ;;  %v78_v31 = vmul.f32 %v64_v23, %v34_v24  ;;  %v77_v32 = vmul.f32 %v60_v25, %v33_v28 }
  0x1c   :  { %v79_v27 = vadd.f32 %v73_v20, %v72_v19 }
  0x1d   :  { %v85_v35 = vsel %vm84_vm0, %v78_v31, 0.0 }
  0x1e   :  { %v80_v30 = vadd.f32 %v79_v27, %v74_v21 }
  0x20   :  { %v81_v33 = vadd.f32 %v80_v30, %v75_v26 }
  0x22   :  { %v82_v34 = vadd.f32 %v81_v33, %v76_v29 }
  0x24   :  { %v83_v36 = vadd.f32 %v82_v34, %v77_v32 }
  0x26   :  { %v86_v37 = vadd.f32 %v85_v35, %v83_v36 }
  0x28   :  { %87 = vadd.xlane.f32.xlu0 %v86_v37 }
  0xb5   :  { %v88_v41 = vpop.xlane.xlu0 %87 }
  0xb6   :  { %v91_v42 = vadd.f32 %v90_v40, %v88_v41 }
  0xb8   :  { %v98_v43 = vrot.slane %v91_v42, %v97_v39 }
  0xba   :  { %101 = vst.msk [vmem:[#allocation6] sm:$0x1] %vm100_vm1, %v98_v43 }
  0xbb   :  { %152 = shalt.err (!%p149_p12)
}
  0xbc   :  { %s153_s2 = scalar_lea.hbm %s222_s3, 16 }
  0xbd   :  { %p154_p13 = scmp.ne.s32.totalorder %s222_s3, %s153_s2  ;;  %p157_p0 = scmp.lt.u32.totalorder %s153_s2, %s222_s3 }
  0xbf   :  { %p159_p1 = pnand %p157_p0, %p154_p13 }
  0xc1   :  { %162 = shalt.err (!%p159_p1)
}
  0xc2   :  { %111 = dma.vmem_to_hbm [thread:$0]  %s109_s27, 16, %s222_s3, [#allocation5]  }
  0xc3   :  { %165 = dma.done.wait [#allocation5], 16  }
  0xc4   :  { %166 = vsyncadd [#allocation5], 4294967280 }
  0xc5   :  { %115 = vsyncpa [#allocation4], 1 }
  0xc6   :  { %116 = vsyncpa [#allocation5], 1 }

</bundles_post_ra>
